<compile_context>
chip_gen: v7x
topology: tpu7x:2x2x1
jax: 0.10.0
libtpu: 0.0.40
codegen_flags: <defaults>
</compile_context>

<pallas_src>
import math
from functools import partial

import jax
import jax.numpy as jnp
from jax.experimental import pallas as pl
from jax.experimental.pallas import tpu as pltpu

SMOOTH = 1.0      # BinaryDiceLoss default (p = 2 -> x * x)
LANE = 128
SUBLANE = 8


def _round_up(x, m):
    return (x + m - 1) // m * m


def _dice_partial_kernel(p_ref, t_ref, num_ref, den_ref, *,
                         tile_rows, valid_elems, need_mask):
    """Accumulate per-(batch, class) dice partial sums over one spatial tile.

    p_ref/t_ref : (1, C, tile_rows, 128) blocks of predict / target.
    num_ref/den_ref : (1, C, 8, 128) f32 accumulators, resident across the spatial axis.
    """
    s = pl.program_id(1)

    @pl.when(s == 0)
    def _init():
        num_ref[...] = jnp.zeros_like(num_ref)
        den_ref[...] = jnp.zeros_like(den_ref)

    p = p_ref[...].astype(jnp.float32)           # (1, C, TR, 128)
    t = t_ref[...].astype(jnp.float32)

    # Softmax over the channel axis. C is a leading axis, so max/sum over C are
    # elementwise VPU ops across whole vregs (no XLU reduces).
    m = jnp.max(p, axis=1, keepdims=True)
    e = jnp.exp(p - m)
    inv = 1.0 / jnp.sum(e, axis=1, keepdims=True)    # one exact divide per position
    sm = e * inv

    if need_mask:
        # Zero softmax at padded spatial positions (flattened index >= valid_elems)
        # so they do not leak into the sm*sm term. Target is zero-padded already.
        row0 = s * tile_rows
        rows = jax.lax.broadcasted_iota(jnp.int32, (tile_rows, LANE), 0) + row0
        lanes = jax.lax.broadcasted_iota(jnp.int32, (tile_rows, LANE), 1)
        valid = (rows * LANE + lanes) < valid_elems
        sm = jnp.where(valid[None, None, :, :], sm, 0.0)

    num_c = sm * t                   # (1, C, TR, 128)
    den_c = sm * sm + t * t

    # Fold tile_rows down to a single (8, 128) vreg tile per (n, c) using pure
    # elementwise vreg adds (VPU); the one cross-lane reduce happens later, in JAX,
    # on the tiny accumulator output.
    num_f = num_c[:, :, 0:SUBLANE, :]
    den_f = den_c[:, :, 0:SUBLANE, :]
    for g in range(1, tile_rows // SUBLANE):
        lo = g * SUBLANE
        num_f = num_f + num_c[:, :, lo:lo + SUBLANE, :]
        den_f = den_f + den_c[:, :, lo:lo + SUBLANE, :]

    num_ref[...] += num_f
    den_ref[...] += den_f


def dice_loss(predict, target, *, tile_rows=None):
    """DiceLoss forward: softmax(predict, axis=1) + per-class binary dice, averaged."""
    assert predict.shape == target.shape, "predict & target shape do not match"
    N, C = int(predict.shape[0]), int(predict.shape[1])
    S = int(math.prod(predict.shape[2:]))

    s_rows = pl.cdiv(S, LANE)
    rows_min = _round_up(s_rows, SUBLANE)

    if tile_rows is None:
        # Keep 2 inputs x 2 pipeline buffers of (C, tile_rows, 128) f32 under ~16 MiB:
        # fits the default scoped VMEM on v5e/v6e and leaves headroom on v7x (64 MiB).
        budget = 16 * 1024 * 1024
        per_row = 2 * 2 * C * LANE * 4
        tile_rows = min(1024, max(SUBLANE, budget // per_row))
    tile_rows = max(SUBLANE, tile_rows - tile_rows % SUBLANE)
    tile_rows = min(tile_rows, rows_min)

    rows_pad = _round_up(s_rows, tile_rows)
    s_pad = rows_pad * LANE
    num_tiles = rows_pad // tile_rows

    p3 = predict.reshape(N, C, S)
    t3 = target.reshape(N, C, S)
    if s_pad != S:
        pad = ((0, 0), (0, 0), (0, s_pad - S))
        p3 = jnp.pad(p3, pad)
        t3 = jnp.pad(t3, pad)
    p4 = p3.reshape(N, C, rows_pad, LANE)
    t4 = t3.reshape(N, C, rows_pad, LANE)

    kernel = partial(
        _dice_partial_kernel,
        tile_rows=tile_rows,
        valid_elems=S,
        need_mask=(s_pad != S),
    )

    acc_shape = jax.ShapeDtypeStruct((N, C, SUBLANE, LANE), jnp.float32)
    acc_spec = pl.BlockSpec((1, C, SUBLANE, LANE), lambda n, s: (n, 0, 0, 0))
    in_spec = pl.BlockSpec((1, C, tile_rows, LANE), lambda n, s: (n, 0, s, 0))

    num_acc, den_acc = pl.pallas_call(
        kernel,
        out_shape=(acc_shape, acc_shape),
        grid=(N, num_tiles),
        in_specs=[in_spec, in_spec],
        out_specs=(acc_spec, acc_spec),
        compiler_params=pltpu.CompilerParams(
            dimension_semantics=("parallel", "arbitrary"),
            vmem_limit_bytes=48 * 1024 * 1024,
        ),
    )(p4, t4)

    # Tiny epilogue in plain JAX: one cross-lane reduction + scalar combine.
    num = jnp.sum(num_acc, axis=(2, 3)) + SMOOTH      # (N, C)
    den = jnp.sum(den_acc, axis=(2, 3)) + SMOOTH      # (N, C)
    loss_nc = 1.0 - num / den                         # (N, C)
    # reduction='mean' over batch per class, then sum over classes / C.
    return jnp.sum(jnp.mean(loss_nc, axis=0)) / C


def dice_loss_ref(predict, target):
    """Pure-JAX reference mirroring the PyTorch DiceLoss/BinaryDiceLoss semantics."""
    N, C = predict.shape[0], predict.shape[1]
    p = jax.nn.softmax(predict.astype(jnp.float32), axis=1).reshape(N, C, -1)
    t = target.astype(jnp.float32).reshape(N, C, -1)
    num = jnp.sum(p * t, axis=-1) + SMOOTH
    den = jnp.sum(p * p + t * t, axis=-1) + SMOOTH
    loss_nc = 1.0 - num / den
    return jnp.sum(jnp.mean(loss_nc, axis=0)) / C


if __name__ == "__main__":
    key = jax.random.PRNGKey(0)

    def make_inputs(k, n, c, h, w):
        k1, k2 = jax.random.split(k)
        pred = jax.random.normal(k1, (n, c, h, w), dtype=jnp.float32)
        labels = jax.random.randint(k2, (n, h, w), 0, c)
        targ = jnp.transpose(jax.nn.one_hot(labels, c, dtype=jnp.float32), (0, 3, 1, 2))
        return pred, targ

    ka, kb = jax.random.split(key)

    # Primary case: (2, 4, 16, 16), single spatial tile.
    predict, target = make_inputs(ka, 2, 4, 16, 16)
    out = jax.block_until_ready(dice_loss(predict, target))
    ref = dice_loss_ref(predict, target)
    assert jnp.allclose(out, ref, atol=1e-5, rtol=1e-5), ("case1", out, ref)

    # Exercises the multi-tile spatial grid, the sublane fold and the padding mask.
    predict2, target2 = make_inputs(kb, 2, 4, 48, 48)
    out2 = jax.block_until_ready(dice_loss(predict2, target2, tile_rows=16))
    ref2 = dice_loss_ref(predict2, target2)
    assert jnp.allclose(out2, ref2, atol=1e-5, rtol=1e-5), ("case2", out2, ref2)

    print("KERNEL_OK")
</pallas_src>

<mosaic_0001>
module attributes {stable_mosaic.version = 11 : i64} {
  func.func @_dice_partial_kernel(%arg0: i32, %arg1: i32, %arg2: memref<1x4x8x128xf32, #tpu.memory_space<vmem>>, %arg3: memref<1x4x8x128xf32, #tpu.memory_space<vmem>>, %arg4: memref<1x4x8x128xf32, #tpu.memory_space<vmem>>, %arg5: memref<1x4x8x128xf32, #tpu.memory_space<vmem>>) attributes {dimension_semantics = [#tpu.dimension_semantics<parallel>, #tpu.dimension_semantics<arbitrary>], iteration_bounds = array<i64: 2, 1>, scalar_prefetch = 0 : i64, scratch_operands = 0 : i64, tpu.core_type = #tpu.core_type<tc>, window_params = [{transform_indices = @transform_0, window_bounds = array<i64: 1, 4, 8, 128>}, {transform_indices = @transform_1, window_bounds = array<i64: 1, 4, 8, 128>}, {transform_indices = @transform_2, window_bounds = array<i64: 1, 4, 8, 128>}, {transform_indices = @transform_3, window_bounds = array<i64: 1, 4, 8, 128>}]} {
    %c0_i32 = arith.constant 0 : i32
    %0 = arith.cmpi eq, %arg1, %c0_i32 : i32
    %1 = arith.extui %0 : i1 to i32
    %c0_i32_0 = arith.constant 0 : i32
    %2 = arith.cmpi ne, %1, %c0_i32_0 : i32
    scf.if %2 {
      %cst_27 = arith.constant 0.000000e+00 : f32
      %41 = vector.broadcast %cst_27 : f32 to vector<1x4x8x128xf32>
      %c0_28 = arith.constant 0 : index
      %c0_29 = arith.constant 0 : index
      %c0_30 = arith.constant 0 : index
      %c0_31 = arith.constant 0 : index
      %42 = vector.load %arg4[%c0_28, %c0_29, %c0_30, %c0_31] : memref<1x4x8x128xf32, #tpu.memory_space<vmem>>, vector<1x4x8x128xf32>
      tpu.vector_store %arg4[%c0_28, %c0_29, %c0_30, %c0_31], %41 {strides = array<i32>} : memref<1x4x8x128xf32, #tpu.memory_space<vmem>>, vector<1x4x8x128xf32>,
      %cst_32 = arith.constant 0.000000e+00 : f32
      %43 = vector.broadcast %cst_32 : f32 to vector<1x4x8x128xf32>
      %c0_33 = arith.constant 0 : index
      %c0_34 = arith.constant 0 : index
      %c0_35 = arith.constant 0 : index
      %c0_36 = arith.constant 0 : index
      %44 = vector.load %arg5[%c0_33, %c0_34, %c0_35, %c0_36] : memref<1x4x8x128xf32, #tpu.memory_space<vmem>>, vector<1x4x8x128xf32>
      tpu.vector_store %arg5[%c0_33, %c0_34, %c0_35, %c0_36], %43 {strides = array<i32>} : memref<1x4x8x128xf32, #tpu.memory_space<vmem>>, vector<1x4x8x128xf32>,
    } else {
    }
    %c0 = arith.constant 0 : index
    %c0_1 = arith.constant 0 : index
    %c0_2 = arith.constant 0 : index
    %c0_3 = arith.constant 0 : index
    %3 = vector.load %arg2[%c0, %c0_1, %c0_2, %c0_3] : memref<1x4x8x128xf32, #tpu.memory_space<vmem>>, vector<1x4x8x128xf32>
    %c0_4 = arith.constant 0 : index
    %c0_5 = arith.constant 0 : index
    %c0_6 = arith.constant 0 : index
    %c0_7 = arith.constant 0 : index
    %4 = vector.load %arg3[%c0_4, %c0_5, %c0_6, %c0_7] : memref<1x4x8x128xf32, #tpu.memory_space<vmem>>, vector<1x4x8x128xf32>
    %cst = arith.constant dense<0xFF800000> : vector<1x8x128xf32>
    %5 = vector.multi_reduction <maximumf>, %3, %cst [1] : vector<1x4x8x128xf32> to vector<1x8x128xf32>
    %6 = vector.shape_cast %5 : vector<1x8x128xf32> to vector<1x1x8x128xf32>
    %7 = vector.broadcast %6 : vector<1x1x8x128xf32> to vector<1x4x8x128xf32>
    %8 = arith.subf %3, %7 : vector<1x4x8x128xf32>
    %9 = math.exp %8 : vector<1x4x8x128xf32>
    %cst_8 = arith.constant dense<0.000000e+00> : vector<1x8x128xf32>
    %10 = vector.multi_reduction <add>, %9, %cst_8 [1] : vector<1x4x8x128xf32> to vector<1x8x128xf32>
    %11 = vector.shape_cast %10 : vector<1x8x128xf32> to vector<1x1x8x128xf32>
    %cst_9 = arith.constant 1.000000e+00 : f32
    %12 = vector.broadcast %cst_9 : f32 to vector<1x1x8x128xf32>
    %13 = arith.divf %12, %11 : vector<1x1x8x128xf32>
    %14 = vector.broadcast %13 : vector<1x1x8x128xf32> to vector<1x4x8x128xf32>
    %15 = arith.mulf %9, %14 : vector<1x4x8x128xf32>
    %c8_i32 = arith.constant 8 : i32
    %16 = arith.muli %arg1, %c8_i32 : i32
    %17 = tpu.iota {dimensions = array<i32: 0>} : vector<8x128xi32>
    %18 = vector.broadcast %16 : i32 to vector<8x128xi32>
    %19 = arith.addi %17, %18 : vector<8x128xi32>
    %20 = tpu.iota {dimensions = array<i32: 1>} : vector<8x128xi32>
    %c128_i32 = arith.constant 128 : i32
    %21 = vector.broadcast %c128_i32 : i32 to vector<8x128xi32>
    %22 = arith.muli %19, %21 : vector<8x128xi32>
    %23 = arith.addi %22, %20 : vector<8x128xi32>
    %c256_i32 = arith.constant 256 : i32
    %24 = vector.broadcast %c256_i32 : i32 to vector<8x128xi32>
    %25 = arith.cmpi slt, %23, %24 : vector<8x128xi32>
    %26 = vector.shape_cast %25 : vector<8x128xi1> to vector<1x1x8x128xi1>
    %cst_10 = arith.constant 0.000000e+00 : f32
    %27 = vector.shape_cast %26 : vector<1x1x8x128xi1> to vector<1x1x8x128xi1>
    %28 = vector.broadcast %27 : vector<1x1x8x128xi1> to vector<1x4x8x128xi1>
    %29 = vector.broadcast %cst_10 : f32 to vector<1x4x8x128xf32>
    %30 = arith.select %28, %15, %29 : vector<1x4x8x128xi1>, vector<1x4x8x128xf32>
    %31 = arith.mulf %30, %4 : vector<1x4x8x128xf32>
    %32 = arith.mulf %30, %30 : vector<1x4x8x128xf32>
    %33 = arith.mulf %4, %4 : vector<1x4x8x128xf32>
    %34 = arith.addf %32, %33 : vector<1x4x8x128xf32>
    %c0_11 = arith.constant 0 : index
    %c0_12 = arith.constant 0 : index
    %c0_13 = arith.constant 0 : index
    %c0_14 = arith.constant 0 : index
    %35 = vector.load %arg4[%c0_11, %c0_12, %c0_13, %c0_14] : memref<1x4x8x128xf32, #tpu.memory_space<vmem>>, vector<1x4x8x128xf32>
    %36 = arith.addf %35, %31 : vector<1x4x8x128xf32>
    %c0_15 = arith.constant 0 : index
    %c0_16 = arith.constant 0 : index
    %c0_17 = arith.constant 0 : index
    %c0_18 = arith.constant 0 : index
    %37 = vector.load %arg4[%c0_15, %c0_16, %c0_17, %c0_18] : memref<1x4x8x128xf32, #tpu.memory_space<vmem>>, vector<1x4x8x128xf32>
    tpu.vector_store %arg4[%c0_15, %c0_16, %c0_17, %c0_18], %36 {strides = array<i32>} : memref<1x4x8x128xf32, #tpu.memory_space<vmem>>, vector<1x4x8x128xf32>,
    %c0_19 = arith.constant 0 : index
    %c0_20 = arith.constant 0 : index
    %c0_21 = arith.constant 0 : index
    %c0_22 = arith.constant 0 : index
    %38 = vector.load %arg5[%c0_19, %c0_20, %c0_21, %c0_22] : memref<1x4x8x128xf32, #tpu.memory_space<vmem>>, vector<1x4x8x128xf32>
    %39 = arith.addf %38, %34 : vector<1x4x8x128xf32>
    %c0_23 = arith.constant 0 : index
    %c0_24 = arith.constant 0 : index
    %c0_25 = arith.constant 0 : index
    %c0_26 = arith.constant 0 : index
    %40 = vector.load %arg5[%c0_23, %c0_24, %c0_25, %c0_26] : memref<1x4x8x128xf32, #tpu.memory_space<vmem>>, vector<1x4x8x128xf32>
    tpu.vector_store %arg5[%c0_23, %c0_24, %c0_25, %c0_26], %39 {strides = array<i32>} : memref<1x4x8x128xf32, #tpu.memory_space<vmem>>, vector<1x4x8x128xf32>,
    return
  }
  func.func @transform_0(%arg0: i32, %arg1: i32) -> (i32, i32, i32, i32) {
    %c0_i32 = arith.constant 0 : i32
    %c0_i32_0 = arith.constant 0 : i32
    %c0_i32_1 = arith.constant 0 : i32
    return %arg0, %c0_i32, %arg1, %c0_i32_0 : i32, i32, i32, i32
  }
  func.func @transform_1(%arg0: i32, %arg1: i32) -> (i32, i32, i32, i32) {
    %c0_i32 = arith.constant 0 : i32
    %c0_i32_0 = arith.constant 0 : i32
    %c0_i32_1 = arith.constant 0 : i32
    return %arg0, %c0_i32, %arg1, %c0_i32_0 : i32, i32, i32, i32
  }
  func.func @transform_2(%arg0: i32, %arg1: i32) -> (i32, i32, i32, i32) {
    %c0_i32 = arith.constant 0 : i32
    %c0_i32_0 = arith.constant 0 : i32
    %c0_i32_1 = arith.constant 0 : i32
    %c0_i32_2 = arith.constant 0 : i32
    return %arg0, %c0_i32, %c0_i32_0, %c0_i32_1 : i32, i32, i32, i32
  }
  func.func @transform_3(%arg0: i32, %arg1: i32) -> (i32, i32, i32, i32) {
    %c0_i32 = arith.constant 0 : i32
    %c0_i32_0 = arith.constant 0 : i32
    %c0_i32_1 = arith.constant 0 : i32
    %c0_i32_2 = arith.constant 0 : i32
    return %arg0, %c0_i32, %c0_i32_0, %c0_i32_1 : i32, i32, i32, i32
  }
}

</mosaic_0001>

<bundles_post_ra>
// kernel: tpu_custom_call.1
= control target key start
LH: loop header
LB: loop body
LE: loop exit
PB: predicated region body
PF: predicated region fallthrough
CT: control target
= control target key end

     0   :  { %9 = vsyncpa [#allocation3], 0  ;;  %s1151_s0 = inlined_call_operand.hbm [shape: f32[2,4,8,128], index: 0, kind: input, shape index: {}]   ;;  %s1152_s1 = inlined_call_operand.hbm [shape: f32[2,4,8,128], index: 1, kind: input, shape index: {}]   ;;  %s1153_s2 = inlined_call_operand.hbm [shape: f32[2,4,8,128], index: 2, kind: output, shape index: {0}]   ;;  %s1154_s3 = inlined_call_operand.hbm [shape: f32[2,4,8,128], index: 3, kind: output, shape index: {1}]  }
   0x1   :  { %11 = vsyncpa [#allocation3 + $0x1], 0 }
   0x2   :  { %12 = vsyncpa [#allocation6], 0 }
   0x3   :  { %14 = vsyncpa [#allocation6 + $0x1], 0 }
   0x4   :  { %15 = vsyncpa [#allocation4], 0 }
   0x5   :  { %17 = vsyncpa [#allocation4 + $0x1], 0 }
   0x6   :  { %18 = vsyncpa [#allocation9], 0 }
   0x7   :  { %20 = vsyncpa [#allocation9 + $0x1], 0  ;;  %s855_s12 = smov 0   ;;  %s857_s13 = smov 0  }
   0x8   :  { %s859_s14 = smov 0   ;;  %s861_s15 = smov 0  }
   0x9   :  { %s863_s16 = smov 0   ;;  %s865_s17 = smov 0  }
   0xa LB: > { %s533_s18 = sadd.s32 4294967295, %s825_s17   ;;  %s534_s19 = sadd.s32 4294967294, %s825_s17   ;;  %s825_s17 = sphi %s865_s17, %s26_s17   ;;  %s821_s16 = sphi %s863_s16, %s1172_s16   ;;  %s817_s15 = sphi %s861_s15, %s1171_s15   ;;  %s813_s14 = sphi %s859_s14, %s1170_s14   ;;  %s809_s13 = sphi %s857_s13, %s1169_s13   ;;  %s805_s12 = sphi %s855_s12, %s1168_s12  }
   0xb   : > { %s38_s20 = sadd.s32 1, %s821_s16  ;;  %s47_s21 = sadd.s32 1, %s813_s14 }
   0xc   : > { %p40_p0 = scmp.ge.s32.totalorder %s38_s20, 2  ;;  %p54_p1 = scmp.ne.s32.totalorder %s813_s14, %s809_s13 }
   0xd   : > { %p55_p2 = scmp.eq.s32.totalorder %s825_s17, 0  ;;  %p60_p3 = scmp.ne.s32.totalorder %s809_s13, %s805_s12 }
   0xe   : > { %s1174_s20 = smov (%p40_p0, %s38_s20), 0  ;;  %p61_p5 = scmp.eq.s32.totalorder %s533_s18, 0 }
   0xf   : > { %p896_p4 = por %p55_p2, %p54_p1  ;;  %s42_s23 = ssub.s32 %s821_s16, %s1174_s20 }
  0x10   : > { %p112_p6 = scmp.eq.s32.totalorder %s533_s18, 1  ;;  %p45_p7 = scmp.eq.s32.totalorder %s42_s23, 0 }
  0x11   : > { %p902_p8 = por %p61_p5, %p60_p3  ;;  %p118_p10 = scmp.eq.s32.totalorder %s534_s19, 1 }
  0x12   : > { %p906_p9 = por %p112_p6, %p54_p1  ;;  %p582_p13 = scmp.lt.s32.totalorder %s825_s17, 2 }
  0x13   : > { %s1158_s24 = scalar_select %p902_p8, 1, 0 }
  0x14   : > { %s1159_s25 = scalar_select %p906_p9, 1, 0 }
  0x15   : > { %s911_s26 = scalar_select %p45_p7, %s813_s14, %s47_s21  }
  0x16   : > { %p913_p11 = por %p118_p10, %p60_p3  ;;  %s920_s28 = sand.u32 1, %s813_s14  }
  0x17   : > { %s537_s29 = sshll.u32 %s920_s28, 5  ;;  %s556_s30 = sshll.u32 %s821_s16, 9 }
  0x18   : > { %s1160_s27 = scalar_select %p913_p11, 1, 0 }
  0x19   : > { %s929_s6 = scalar_lea.hbm %s1151_s0, %s556_s30  ;;  %s168_s7 = scalar_lea.vmem [#allocation2], %s537_s29 }
  0x1a   : > { %s176_s8 = sshll.u32 %s168_s7, 4  ;;  %p937_p0 = pnand %p582_p13, %p896_p4  ;;  %s933_s8 = int_to_ptr.vmem [resolvable:$true] %s176_s8 }
  0x1b   : > { %s165_s10 = scalar_lea.sflag [#allocation3], %s920_s28  ;;  %s647_s11 = scalar_lea.hbm %s929_s6, 512 }
  0x1c   : > { %p648_p2 = scmp.ne.s32.totalorder %s929_s6, %s647_s11  ;;  %p649_p3 = pneg %p937_p0 }
  0x1d   : > { %s652_s21 = scalar_lea.hbm %s1151_s0, 1024  ;;  %p653_p4 = scmp.lt.u32.totalorder %s929_s6, %s1151_s0 }
  0x1e   : > { %p650_p5 = pnand %p649_p3, %p648_p2  ;;  %p654_p7 = scmp.lt.u32.totalorder %s652_s21, %s647_s11 }
  0x1f   : > { %p656_p13 = scmp.lt.u32.totalorder %s647_s11, %s929_s6 }
  0x20   : > { %p651_p6 = pneg %p650_p5  ;;  %p655_p10 = por %p654_p7, %p653_p4 }
  0x22   : > { %p657_p12 = por %p656_p13, %p655_p10 }
  0x24   : > { %p658_p1 = pnand %p657_p12, %p651_p6 }
  0x26   : > { %661 = shalt.err (!%p658_p1)
}
  0x27   : > { %s662_s4 = scalar_lea.vmem %s933_s8, 512  ;;  %s827_s5 = smov [#allocation2]  }
  0x28   : > { %p663_p2 = scmp.ne.s32.totalorder %s933_s8, %s662_s4  ;;  %s667_s7 = sshll.u32 %s827_s5, 4  ;;  %s668_s7 = int_to_ptr.vmem [resolvable:$false] %s667_s7 }
  0x29   : > { %s669_s18 = scalar_lea.vmem %s668_s7, 1024  ;;  %p670_p9 = scmp.lt.s32.totalorder %s933_s8, %s668_s7 }
  0x2a   : > { %p665_p5 = pnand %p663_p2, %p649_p3  ;;  %p671_p4 = scmp.lt.s32.totalorder %s669_s18, %s662_s4 }
  0x2c   : > { %p666_p11 = pneg %p665_p5  ;;  %p672_p7 = por %p671_p4, %p670_p9 }
  0x2e   : > { %p673_p10 = pnand %p672_p7, %p666_p11 }
  0x30   : > { %676 = shalt.err (!%p673_p10)
}
  0x31   : > { %s828_s11 = smov 128   ;;  %s829_s19 = smov 8  }
  0x32   : > { %571 = dma.hbm_to_vmem [thread:$0]  (!%p937_p0), %s929_s6, 512, %s933_s8, %s165_s10, %s828_s11, %s828_s11, %s829_s19  }
  0x33   : > { %p206_p9 = scmp.lt.s32.totalorder %s825_s17, 3  ;;  %s979_s23 = scalar_lea.hbm %s1152_s1, %s556_s30 }
  0x34   : > { %p1162_p11 = scmp.ge.s32.totalorder %s825_s17, 1  ;;  %s190_s5 = scalar_lea.vmem [#allocation5], %s537_s29 }
  0x35   : > { %s198_s7 = sshll.u32 %s190_s5, 4  ;;  %s187_s6 = scalar_lea.sflag [#allocation6], %s920_s28  ;;  %s989_s7 = int_to_ptr.vmem [resolvable:$true] %s198_s7 }
  0x36   : > { %p983_p12 = pnand %p1162_p11, %p206_p9  ;;  %s677_s8 = scalar_lea.hbm %s979_s23, 512 }
  0x37   : > { %p678_p1 = scmp.ne.s32.totalorder %s979_s23, %s677_s8  ;;  %s682_s18 = scalar_lea.hbm %s1152_s1, 1024 }
  0x38   : > { %p683_p2 = scmp.lt.u32.totalorder %s979_s23, %s1152_s1  ;;  %p684_p5 = scmp.lt.u32.totalorder %s682_s18, %s677_s8 }
  0x39   : > { %p680_p6 = pnand %p678_p1, %p649_p3  ;;  %p686_p7 = scmp.lt.u32.totalorder %s677_s8, %s979_s23 }
  0x3a   : > { %p685_p4 = por %p684_p5, %p683_p2 }
  0x3b   : > { %p681_p13 = pneg %p680_p6 }
  0x3c   : > { %p687_p10 = por %p686_p7, %p685_p4 }
  0x3e   : > { %p688_p9 = pnand %p687_p10, %p681_p13 }
  0x40   : > { %691 = shalt.err (!%p688_p9)
}
  0x41   : > { %s692_s29 = scalar_lea.vmem %s989_s7, 512  ;;  %s830_s5 = smov [#allocation5]  }
  0x42   : > { %p693_p11 = scmp.ne.s32.totalorder %s989_s7, %s692_s29  ;;  %s697_s30 = sshll.u32 %s830_s5, 4  ;;  %s698_s30 = int_to_ptr.vmem [resolvable:$false] %s697_s30 }
  0x43   : > { %s699_s10 = scalar_lea.vmem %s698_s30, 1024  ;;  %p700_p8 = scmp.lt.s32.totalorder %s989_s7, %s698_s30 }
  0x44   : > { %p695_p1 = pnand %p693_p11, %p649_p3  ;;  %p701_p2 = scmp.lt.s32.totalorder %s699_s10, %s692_s29 }
  0x46   : > { %p696_p6 = pneg %p695_p1  ;;  %p702_p5 = por %p701_p2, %p700_p8 }
  0x48   : > { %p703_p4 = pnand %p702_p5, %p696_p6 }
  0x4a   : > { %706 = shalt.err (!%p703_p4)
}
  0x4b   : > { %574 = dma.hbm_to_vmem [thread:$0]  (!%p937_p0), %s979_s23, 512, %s989_s7, %s187_s6, %s828_s11, %s828_s11, %s829_s19  }
  0x4c   : > { %210 = sbr.rel (%p983_p12) target bundleno = 170 (0xaa), region = 28  ;;  %s1023_s8 = sand.u32 (!%p983_p12), 1, %s809_s13  }
  0x4d   : > { %s1026_s18 = sshll.u32 (!%p983_p12), %s1023_s8, 5  ;;  %s213_s9 = scalar_lea.sflag (!%p983_p12), [#allocation3], %s1023_s8 }
  0x4e   : > { %s216_s21 = scalar_lea.vmem (!%p983_p12), [#allocation2], %s1026_s18  ;;  %p1164_p8 = scmp.ne.s32.totalorder (!%p983_p12), %s1158_s24, 0 }
  0x53   : > { %788 = dma.done.wait (%p1164_p8), %s213_s9, 512  }
  0x54   : > { %790 = vsyncadd (%p1164_p8), %s213_s9, 4294966784  ;;  %s222_s28 = scalar_lea.sflag [#allocation6], %s1023_s8  ;;  %s1036_s11 = scalar_lea.vmem [#allocation5], %s1026_s18 }
  0x55   : > { %792 = dma.done.wait (%p1164_p8), %s222_s28, 512  }
  0x56   : > { %794 = vsyncadd (%p1164_p8), %s222_s28, 4294966784  ;;  %v270_v0 = vld [vmem:[%s216_s21] sm:$0xff]  ;;  %v271_v1 = vld [vmem:[%s216_s21 + $0x8] sm:$0xff]  ;;  %v303_v19 = vlaneseq  ;;  %s558_s24 = sshll.u32 %s817_s15, 9  ;;  %s250_s19 = scalar_lea.vmem [#allocation7], %s1026_s18 }
  0x57   : > { %v272_v2 = vld [vmem:[%s216_s21 + $0x10] sm:$0xff]  ;;  %v273_v3 = vld [vmem:[%s216_s21 + $0x18] sm:$0xff]  ;;  %v278_v4 = vmax.f32 %v270_v0, %v271_v1  ;;  %v274_v27 = vld [vmem:[%s1036_s11] sm:$0xff]  ;;  %s377_s23 = sshll.u32 %s250_s19, 4  ;;  %s1053_s6 = scalar_lea.hbm %s1153_s2, %s558_s24  ;;  %s1055_s23 = int_to_ptr.vmem [resolvable:$true] %s377_s23 }
  0x58   : > { %v279_v5 = vmax.f32 %v272_v2, %v273_v3  ;;  %v304_v23 = vshrl.u32 %v303_v19, 7  ;;  %v308_v24 = vand.u32 127, %v303_v19  ;;  %v275_v28 = vld [vmem:[%s1036_s11 + $0x8] sm:$0xff]  ;;  %v276_v29 = vld [vmem:[%s1036_s11 + $0x10] sm:$0xff]  ;;  %v277_v30 = vld [vmem:[%s1036_s11 + $0x18] sm:$0xff]  ;;  %v326_v36 = vmul.f32 %v274_v27, %v274_v27  ;;  %s1058_s22 = scalar_lea.vmem [#allocation8], %s1026_s18  ;;  %s1066_s10 = scalar_lea.hbm %s1154_s3, %s558_s24 }
  0x59   : > { %v327_v37 = vmul.f32 %v275_v28, %v275_v28  ;;  %v328_v38 = vmul.f32 %v276_v29, %v276_v29  ;;  %v329_v39 = vmul.f32 %v277_v30, %v277_v30  ;;  %s393_s29 = sshll.u32 %s1058_s22, 4  ;;  %s359_s18 = scalar_lea.sflag [#allocation4], %s1023_s8  ;;  %s1068_s29 = int_to_ptr.vmem [resolvable:$true] %s393_s29 }
  0x5a   : > { %v280_v6 = vmax.f32 %v278_v4, %v279_v5  ;;  %v309_v25 = vmul.u32 128, %v304_v23  ;;  %s707_s9 = scalar_lea.vmem %s1055_s23, 512  ;;  %p1165_p3 = scmp.ne.s32.totalorder %s1159_s25, 0 }
  0x5b   : > { %p708_p0 = scmp.ne.s32.totalorder %s1055_s23, %s707_s9  ;;  %s831_s21 = smov [#allocation7]  }
  0x5c   : > { %v281_v7 = vsub.f32 %v270_v0, %v280_v6  ;;  %v282_v8 = vsub.f32 %v271_v1, %v280_v6  ;;  %v283_v9 = vsub.f32 %v272_v2, %v280_v6  ;;  %v284_v10 = vsub.f32 %v273_v3, %v280_v6  ;;  %s711_s28 = sshll.u32 %s831_s21, 4  ;;  %s712_s28 = int_to_ptr.vmem [resolvable:$false] %s711_s28 }
  0x5d   : > { %v310_v26 = vadd.s32 %v309_v25, %v308_v24  ;;  %p709_p12 = pnand %p708_p0, %p1165_p3  ;;  %s713_s11 = scalar_lea.vmem %s712_s28, 1024 }
  0x5e   : > { %v285_v11 = vmul.f32 1.442695, %v281_v7  ;;  %v287_v12 = vmul.f32 1.442695, %v282_v8  ;;  %v289_v13 = vmul.f32 1.442695, %v283_v9  ;;  %p714_p7 = scmp.lt.s32.totalorder %s1055_s23, %s712_s28  ;;  %p715_p10 = scmp.lt.s32.totalorder %s713_s11, %s707_s9 }
  0x5f   : > { %v291_v14 = vmul.f32 1.442695, %v284_v10  ;;  %vm311_vm0 = vcmp.lt.s32.totalorder %v310_v26, 256  ;;  %p710_p13 = pneg %p709_p12 }
  0x60   : > { %637 = vpow2.f32 %v285_v11  ;;  %p716_p9 = por %p715_p10, %p714_p7 }
  0x61   : > { %639 = vpow2.f32 %v287_v12 }
  0x62   : > { %641 = vpow2.f32 %v289_v13  ;;  %p717_p11 = pnand %p716_p9, %p710_p13 }
  0x63   : > { %643 = vpow2.f32 %v291_v14 }
  0x6a   : > { %v638_v15 = vpop.eup %637 }
  0x6b   : > { %v640_v16 = vpop.eup %639 }
  0x6c   : > { %v642_v17 = vpop.eup %641  ;;  %v293_v18 = vadd.f32 %v640_v16, %v638_v15 }
  0x6d   : > { %v644_v20 = vpop.eup %643 }
  0x6e   : > { %v294_v21 = vadd.f32 %v642_v17, %v293_v18 }
  0x70   : > { %v295_v22 = vadd.f32 %v644_v20, %v294_v21 }
  0x72   : > { %645 = vrcp.f32 %v295_v22 }
  0x7c   : > { %v646_v31 = vpop.eup %645 }
  0x7d   : > { %v298_v32 = vmul.f32 %v646_v31, %v638_v15  ;;  %v299_v33 = vmul.f32 %v646_v31, %v640_v16  ;;  %v300_v34 = vmul.f32 %v646_v31, %v642_v17  ;;  %v301_v35 = vmul.f32 %v646_v31, %v644_v20 }
  0x7f   : > { %v314_v40 = vsel %vm311_vm0, %v298_v32, 0.0  ;;  %v315_v41 = vsel %vm311_vm0, %v299_v33, 0.0  ;;  %v316_v42 = vsel %vm311_vm0, %v300_v34, 0.0  ;;  %v317_v43 = vsel %vm311_vm0, %v301_v35, 0.0 }
  0x80   : > { %v318_v44 = vmul.f32 %v314_v40, %v274_v27  ;;  %v319_v45 = vmul.f32 %v315_v41, %v275_v28  ;;  %v320_v46 = vmul.f32 %v316_v42, %v276_v29  ;;  %v321_v47 = vmul.f32 %v317_v43, %v277_v30 }
  0x81   : > { %v322_v48 = vmul.f32 %v314_v40, %v314_v40  ;;  %v323_v49 = vmul.f32 %v315_v41, %v315_v41  ;;  %v324_v50 = vmul.f32 %v316_v42, %v316_v42  ;;  %v325_v51 = vmul.f32 %v317_v43, %v317_v43 }
  0x82   : > { %342 = vst [vmem:[%s250_s19] sm:$0xff] %v318_v44  ;;  %343 = vst [vmem:[%s250_s19 + $0x8] sm:$0xff] %v319_v45 }
  0x83   : > { %v330_v52 = vadd.f32 %v326_v36, %v322_v48  ;;  %v331_v53 = vadd.f32 %v327_v37, %v323_v49  ;;  %v332_v54 = vadd.f32 %v328_v38, %v324_v50  ;;  %v333_v55 = vadd.f32 %v329_v39, %v325_v51  ;;  %344 = vst [vmem:[%s250_s19 + $0x10] sm:$0xff] %v320_v46 }
  0x84   : > { %345 = vst [vmem:[%s250_s19 + $0x18] sm:$0xff] %v321_v47 }
  0x85   : > { %720 = shalt.err (!%p717_p11)
}
  0x86   : > { %s721_s15 = scalar_lea.hbm %s1053_s6, 512  ;;  %s725_s4 = scalar_lea.hbm %s1153_s2, 1024 }
  0x87   : > { %p722_p1 = scmp.ne.s32.totalorder %s1053_s6, %s721_s15  ;;  %p726_p5 = scmp.lt.u32.totalorder %s1053_s6, %s1153_s2 }
  0x88   : > { %p727_p4 = scmp.lt.u32.totalorder %s725_s4, %s721_s15  ;;  %p729_p0 = scmp.lt.u32.totalorder %s721_s15, %s1053_s6 }
  0x89   : > { %p723_p6 = pnand %p722_p1, %p1165_p3 }
  0x8a   : > { %p728_p8 = por %p727_p4, %p726_p5 }
  0x8b   : > { %p724_p2 = pneg %p723_p6 }
  0x8c   : > { %p730_p12 = por %p729_p0, %p728_p8 }
  0x8e   : > { %p731_p13 = pnand %p730_p12, %p724_p2 }
  0x90   : > { %734 = shalt.err (!%p731_p13)
}
  0x91   : > { %s832_s30 = smov 128   ;;  %s833_s9 = smov 8   ;;  %354 = vst [vmem:[%s1058_s22] sm:$0xff] %v330_v52  ;;  %355 = vst [vmem:[%s1058_s22 + $0x8] sm:$0xff] %v331_v53 }
  0x92   : > { %564 = dma.vmem_to_hbm [thread:$0]  (%p1165_p3), %s1055_s23, 512, %s1053_s6, %s359_s18, %s832_s30, %s832_s30, %s833_s9  }
  0x93   : > { %356 = vst [vmem:[%s1058_s22 + $0x10] sm:$0xff] %v332_v54  ;;  %357 = vst [vmem:[%s1058_s22 + $0x18] sm:$0xff] %v333_v55  ;;  %s364_s21 = scalar_lea.sflag [#allocation9], %s1023_s8  ;;  %s735_s28 = scalar_lea.vmem %s1068_s29, 512 }
  0x94   : > { %p736_p7 = scmp.ne.s32.totalorder %s1068_s29, %s735_s28  ;;  %s834_s11 = smov [#allocation8]  }
  0x95   : > { %s739_s15 = sshll.u32 %s834_s11, 4  ;;  %s740_s15 = int_to_ptr.vmem [resolvable:$false] %s739_s15 }
  0x96   : > { %p737_p10 = pnand %p736_p7, %p1165_p3  ;;  %s741_s24 = scalar_lea.vmem %s740_s15, 1024 }
  0x97   : > { %p742_p11 = scmp.lt.s32.totalorder %s1068_s29, %s740_s15  ;;  %p743_p1 = scmp.lt.s32.totalorder %s741_s24, %s735_s28 }
  0x98   : > { %p738_p9 = pneg %p737_p10 }
  0x99   : > { %p744_p6 = por %p743_p1, %p742_p11 }
  0x9b   : > { %p745_p2 = pnand %p744_p6, %p738_p9 }
  0x9d   : > { %748 = shalt.err (!%p745_p2)
}
  0x9e   : > { %s749_s23 = scalar_lea.hbm %s1066_s10, 512  ;;  %s753_s18 = scalar_lea.hbm %s1154_s3, 1024 }
  0x9f   : > { %p750_p5 = scmp.ne.s32.totalorder %s1066_s10, %s749_s23  ;;  %p754_p0 = scmp.lt.u32.totalorder %s1066_s10, %s1154_s3 }
  0xa0   : > { %p755_p12 = scmp.lt.u32.totalorder %s753_s18, %s749_s23  ;;  %p757_p7 = scmp.lt.u32.totalorder %s749_s23, %s1066_s10 }
  0xa1   : > { %p751_p4 = pnand %p750_p5, %p1165_p3 }
  0xa2   : > { %p756_p13 = por %p755_p12, %p754_p0 }
  0xa3   : > { %p752_p8 = pneg %p751_p4 }
  0xa4   : > { %p758_p10 = por %p757_p7, %p756_p13 }
  0xa6   : > { %p759_p9 = pnand %p758_p10, %p752_p8 }
  0xa8   : > { %762 = shalt.err (!%p759_p9)
}
  0xa9   : > { %565 = dma.vmem_to_hbm [thread:$0]  (%p1165_p3), %s1068_s29, 512, %s1066_s10, %s364_s21, %s832_s30, %s832_s30, %s833_s9  }
  0xaa PF: > { %s408_s7 = sand.u32 1, %s805_s12   ;;  %p1166_p11 = scmp.ne.s32.totalorder %s1160_s27, 0 }
  0xab   : > { %p1167_p1 = scmp.ge.s32.totalorder %s825_s17, 2  ;;  %s409_s5 = scalar_lea.sflag [#allocation4], %s408_s7 }
  0xad   : > { %p576_p6 = pnand %p1167_p1, %p1166_p11 }
  0xaf   : > { %796 = dma.done.wait (!%p576_p6), %s409_s5, 512  }
  0xb0   : > { %798 = vsyncadd (!%p576_p6), %s409_s5, 4294966784  ;;  %s418_s25 = scalar_lea.sflag [#allocation9], %s408_s7 }
  0xb1   : > { %800 = dma.done.wait (!%p576_p6), %s418_s25, 512  }
  0xb2   : > { %802 = vsyncadd (!%p576_p6), %s418_s25, 4294966784  ;;  %s26_s17 = sadd.s32 1, %s825_s17   ;;  %s1168_s12 = smov %s809_s13 }
  0xb3   : > { %p23_p2 = scmp.ge.s32.totalorder %s26_s17, 4   ;;  %s1169_s13 = smov %s813_s14 }
  0xb4   : > { %s1170_s14 = smov %s911_s26  ;;  %s1171_s15 = smov %s821_s16 }
  0xb5   : > { %s1172_s16 = smov %s1174_s20  ;;  %25 = sbr.rel (!%p23_p2) target bundleno = 10 (0xa), region = 107 }
  0xbc   :  { %423 = vsyncpa [#allocation3], 1 }
  0xbd   :  { %425 = vsyncpa [#allocation3 + $0x1], 1 }
  0xbe   :  { %426 = vsyncpa [#allocation6], 1 }
  0xbf   :  { %428 = vsyncpa [#allocation6 + $0x1], 1 }
  0xc0   :  { %429 = vsyncpa [#allocation4], 1 }
  0xc1   :  { %431 = vsyncpa [#allocation4 + $0x1], 1 }
  0xc2   :  { %432 = vsyncpa [#allocation9], 1 }
  0xc3   :  { %434 = vsyncpa [#allocation9 + $0x1], 1 }

</bundles_post_ra>
